<compile_context>
chip_gen: v6e
topology: v6e:2x2x1
jax: 0.10.0
libtpu: 0.0.40
codegen_flags: <defaults>
</compile_context>

<pallas_src>
import jax
import jax.numpy as jnp
from jax.experimental import pallas as pl
from jax.experimental.pallas import tpu as pltpu

_LANES = 128
_SUBLANES = 8
_VREG = _LANES * _SUBLANES          # 1024 f32 elements per (8,128) vreg
_TARGET_VREG_ROWS = 512             # 512 * 1024 * 4 B = 2 MiB per input per grid step


# ----------------------------- Pallas kernel --------------------------------
def _loss_reduce_kernel(x_ref, z_ref, acc_ref):
    """x/z tiles: (RB, 8, 128) f32.  acc: (4, 8, 128) resident per-batch accumulator.

      acc[0] += per-(sublane,lane) partial sum of L          (total loss)
      acc[1] += per-(sublane,lane) partial sum of z * L      (root loss)
      acc[2] += per-(sublane,lane) partial sum of z          (root mass)
      acc[3] += per-(sublane,lane) partial sum of (z > 0)    (root pixel count)
    with L = max(x,0) - x*z + log(1 + exp(-|x|))   (BCE with logits).
    """
    k = pl.program_id(1)

    @pl.when(k == 0)
    def _():
        acc_ref[...] = jnp.zeros_like(acc_ref)

    x = x_ref[...]
    z = z_ref[...]
    loss = jnp.maximum(x, 0.0) - x * z + jnp.log(jnp.exp(-jnp.abs(x)) + 1.0)

    # axis-0 reductions are elementwise vreg adds (VALU only); the expensive
    # cross-lane/sublane reduction is deferred to JAX glue on the tiny output.
    acc_ref[0, :, :] += jnp.sum(loss, axis=0)
    acc_ref[1, :, :] += jnp.sum(z * loss, axis=0)
    acc_ref[2, :, :] += jnp.sum(z, axis=0)
    acc_ref[3, :, :] += jnp.sum((z > 0.0).astype(jnp.float32), axis=0)


def _pallas_reduce(x2d, z2d):
    """x2d / z2d: [B, N] float32.  Returns (total_L, root_L, sum_z, n_root), each [B]."""
    B, N = x2d.shape
    nvr = pl.cdiv(N, _VREG)                       # vreg-rows needed
    rb = min(_TARGET_VREG_ROWS, nvr)              # vreg-rows per grid step
    k_steps = pl.cdiv(nvr, rb)
    nvr_pad = k_steps * rb
    n_pad = nvr_pad * _VREG

    if n_pad != N:
        # Pad logits with a large negative value (NOT zero: loss(0,0)=log(2))
        # so padded elements contribute exactly 0 to every accumulator.
        x2d = jnp.pad(x2d, ((0, 0), (0, n_pad - N)), constant_values=-1e30)
        z2d = jnp.pad(z2d, ((0, 0), (0, n_pad - N)), constant_values=0.0)

    x4 = x2d.reshape(B, nvr_pad, _SUBLANES, _LANES)
    z4 = z2d.reshape(B, nvr_pad, _SUBLANES, _LANES)

    in_spec = pl.BlockSpec((None, rb, _SUBLANES, _LANES), lambda b, k: (b, k, 0, 0))
    out_spec = pl.BlockSpec((None, 4, _SUBLANES, _LANES), lambda b, k: (b, 0, 0, 0))

    partials = pl.pallas_call(
        _loss_reduce_kernel,
        out_shape=jax.ShapeDtypeStruct((B, 4, _SUBLANES, _LANES), jnp.float32),
        grid=(B, k_steps),
        in_specs=[in_spec, in_spec],
        out_specs=out_spec,
        compiler_params=pltpu.CompilerParams(
            dimension_semantics=("parallel", "arbitrary")),
        cost_estimate=pl.CostEstimate(
            flops=12 * B * n_pad,
            transcendentals=2 * B * n_pad,
            bytes_accessed=2 * B * n_pad * 4 + B * 4 * _VREG * 4),
    )(x4, z4)

    sums = jnp.sum(partials, axis=(-1, -2))       # (B, 4) — tiny final reduction
    return sums[:, 0], sums[:, 1], sums[:, 2], sums[:, 3]


# ------------------------------ forward glue ---------------------------------
def loss2d_forward(net_output, desired_output, before_sigmoid, root_weight,
                   confidence_penalty=0):
    """JAX/Pallas equivalent of Loss2D(confidence_penalty=0).forward(...) default path.

    Inputs: [B, Z, X, Y] float32.  Returns the same 15-tuple as the PyTorch module
    (entries the default path leaves as None are returned as None).
    """
    assert confidence_penalty == 0  # TODO(synk): entropy-regularizer path not implemented

    B, Z, X, Y = desired_output.shape
    n_per_batch = Z * X * Y
    n_total = B * n_per_batch

    x2d = before_sigmoid.reshape(B, n_per_batch).astype(jnp.float32)
    z2d = desired_output.reshape(B, n_per_batch).astype(jnp.float32)

    total_L, root_L, sum_z, n_root_b = _pallas_reduce(x2d, z2d)
    soil_L = total_L - root_L                       # sum((1-z) * L)

    # calculate_root_soil_weights (global, over the whole batch tensor)
    num_roots = jnp.sum(n_root_b)
    num_soils = jnp.float32(n_total) - num_roots
    soil_pixel_weight = (num_soils + num_roots) / (num_soils + root_weight * num_roots)
    root_pixel_weight = soil_pixel_weight * root_weight
    root_pixel_weight = jnp.where(jnp.isinf(root_pixel_weight), 0.0, root_pixel_weight)

    total_root_loss_list = root_pixel_weight * root_L            # [B]
    total_soil_loss_list = soil_pixel_weight * soil_L            # [B]
    total_loss_list = total_root_loss_list + total_soil_loss_list
    average_loss_list = total_loss_list / jnp.float32(n_per_batch)

    root_pixels_total_weight_list = root_pixel_weight * sum_z
    soil_pixels_total_weight_list = soil_pixel_weight * (jnp.float32(n_per_batch) - sum_z)

    # conf_pen == 0 => regularized == unregularized
    return (average_loss_list,            # average_regularized_loss_list
            total_loss_list,              # total_regularized_loss_list
            total_root_loss_list,         # total_regularized_root_loss_list
            total_soil_loss_list,         # total_regularized_soil_loss_list
            average_loss_list,            # average_loss_list
            total_loss_list,              # total_loss_list
            total_root_loss_list,         # total_root_loss_list
            total_soil_loss_list,         # total_soil_loss_list
            root_pixels_total_weight_list,
            soil_pixels_total_weight_list,
            None,                         # iou_loss (not requested)
            None, None, None, None)       # classification statistics (not validation)


# ----------------------------- pure-JAX reference ----------------------------
def _reference(net_output, desired_output, before_sigmoid, root_weight):
    x = before_sigmoid
    z = desired_output
    loss = jnp.maximum(x, 0.0) - x * z + jnp.log(jnp.exp(-jnp.abs(x)) + 1.0)
    num_roots = jnp.sum((z > 0).astype(jnp.float32))
    num_soils = jnp.float32(z.size) - num_roots
    soil_w = (num_soils + num_roots) / (num_soils + root_weight * num_roots)
    root_w = soil_w * root_weight
    soil_mat = (1.0 - z) * soil_w
    root_mat = z * root_w
    wr = root_mat * loss
    ws = soil_mat * loss
    total_root = wr.sum(axis=(-1, -2, -3))
    total_soil = ws.sum(axis=(-1, -2, -3))
    total = total_root + total_soil
    avg = (wr + ws).mean(axis=(-1, -2, -3))
    rw_tot = root_mat.sum(axis=(-1, -2, -3))
    sw_tot = soil_mat.sum(axis=(-1, -2, -3))
    return avg, total, total_root, total_soil, rw_tot, sw_tot


def _run_case(key, shape, root_weight):
    k1, k2 = jax.random.split(key)
    before_sigmoid = jax.random.normal(k1, shape, dtype=jnp.float32)
    net_output = jax.nn.sigmoid(before_sigmoid)
    desired_output = (jax.random.uniform(k2, shape) > 0.7).astype(jnp.float32)

    outs = loss2d_forward(net_output, desired_output, before_sigmoid, root_weight)
    outs = jax.block_until_ready(outs[:10])

    # NaN check (mirrors the PyTorch module's ValueError on NaN loss)
    if bool(jnp.any(jnp.isnan(outs[0]))):
        raise ValueError("Loss is NaN")

    ref = _reference(net_output, desired_output, before_sigmoid, root_weight)
    got = (outs[0], outs[1], outs[2], outs[3], outs[8], outs[9])
    for g, r in zip(got, ref):
        assert jnp.allclose(g, r, rtol=1e-5, atol=1e-5), (shape, g, r)


# ---------------------------------- main --------------------------------------
if __name__ == "__main__":
    key = jax.random.PRNGKey(0)
    ka, kb = jax.random.split(key)

    # Standard aligned small shape (N = 4*16*16 = 1024, exactly one vreg-row).
    _run_case(ka, (2, 4, 16, 16), root_weight=2.0)
    # Non-aligned spatial size (N = 3*20*18 = 1080) to exercise the padding path.
    _run_case(kb, (2, 3, 20, 18), root_weight=2.0)

    print("KERNEL_OK")
</pallas_src>

<mosaic_0001>
module attributes {stable_mosaic.version = 11 : i64} {
  func.func @_loss_reduce_kernel(%arg0: i32, %arg1: i32, %arg2: memref<1x1x8x128xf32, #tpu.memory_space<vmem>>, %arg3: memref<1x1x8x128xf32, #tpu.memory_space<vmem>>, %arg4: memref<1x4x8x128xf32, #tpu.memory_space<vmem>>) attributes {dimension_semantics = [#tpu.dimension_semantics<parallel>, #tpu.dimension_semantics<arbitrary>], iteration_bounds = array<i64: 2, 1>, scalar_prefetch = 0 : i64, scratch_operands = 0 : i64, tpu.core_type = #tpu.core_type<tc>, window_params = [{transform_indices = @transform_0, window_bounds = array<i64: 1, 1, 8, 128>}, {transform_indices = @transform_1, window_bounds = array<i64: 1, 1, 8, 128>}, {transform_indices = @transform_2, window_bounds = array<i64: 1, 4, 8, 128>}]} {
    %c0_i32 = arith.constant 0 : i32
    %0 = arith.cmpi eq, %arg1, %c0_i32 : i32
    %1 = arith.extui %0 : i1 to i32
    %c0_i32_0 = arith.constant 0 : i32
    %2 = arith.cmpi ne, %1, %c0_i32_0 : i32
    scf.if %2 {
      %cst_44 = arith.constant 0.000000e+00 : f32
      %52 = vector.broadcast %cst_44 : f32 to vector<4x8x128xf32>
      %c0_45 = arith.constant 0 : index
      %c0_46 = arith.constant 0 : index
      %c0_47 = arith.constant 0 : index
      %c0_48 = arith.constant 0 : index
      %53 = vector.load %arg4[%c0_45, %c0_46, %c0_47, %c0_48] : memref<1x4x8x128xf32, #tpu.memory_space<vmem>>, vector<1x4x8x128xf32>
      %54 = vector.shape_cast %53 : vector<1x4x8x128xf32> to vector<4x8x128xf32>
      %55 = vector.shape_cast %52 : vector<4x8x128xf32> to vector<1x4x8x128xf32>
      tpu.vector_store %arg4[%c0_45, %c0_46, %c0_47, %c0_48], %55 {strides = array<i32>} : memref<1x4x8x128xf32, #tpu.memory_space<vmem>>, vector<1x4x8x128xf32>,
    } else {
    }
    %c0 = arith.constant 0 : index
    %c0_1 = arith.constant 0 : index
    %c0_2 = arith.constant 0 : index
    %c0_3 = arith.constant 0 : index
    %3 = vector.load %arg2[%c0, %c0_1, %c0_2, %c0_3] : memref<1x1x8x128xf32, #tpu.memory_space<vmem>>, vector<1x1x8x128xf32>
    %4 = vector.shape_cast %3 : vector<1x1x8x128xf32> to vector<1x8x128xf32>
    %c0_4 = arith.constant 0 : index
    %c0_5 = arith.constant 0 : index
    %c0_6 = arith.constant 0 : index
    %c0_7 = arith.constant 0 : index
    %5 = vector.load %arg3[%c0_4, %c0_5, %c0_6, %c0_7] : memref<1x1x8x128xf32, #tpu.memory_space<vmem>>, vector<1x1x8x128xf32>
    %6 = vector.shape_cast %5 : vector<1x1x8x128xf32> to vector<1x8x128xf32>
    %cst = arith.constant 0.000000e+00 : f32
    %7 = vector.broadcast %cst : f32 to vector<1x8x128xf32>
    %8 = arith.maximumf %4, %7 : vector<1x8x128xf32>
    %9 = arith.mulf %4, %6 : vector<1x8x128xf32>
    %10 = arith.subf %8, %9 : vector<1x8x128xf32>
    %11 = math.absf %4 : vector<1x8x128xf32>
    %cst_8 = arith.constant 0.000000e+00 : f32
    %12 = vector.broadcast %cst_8 : f32 to vector<1x8x128xf32>
    %13 = arith.subf %12, %11 : vector<1x8x128xf32>
    %14 = math.exp %13 : vector<1x8x128xf32>
    %cst_9 = arith.constant 1.000000e+00 : f32
    %15 = vector.broadcast %cst_9 : f32 to vector<1x8x128xf32>
    %16 = arith.addf %14, %15 : vector<1x8x128xf32>
    %17 = math.log %16 : vector<1x8x128xf32>
    %18 = arith.addf %10, %17 : vector<1x8x128xf32>
    %c0_10 = arith.constant 0 : index
    %c0_11 = arith.constant 0 : index
    %c0_12 = arith.constant 0 : index
    %c0_13 = arith.constant 0 : index
    %19 = vector.load %arg4[%c0_10, %c0_11, %c0_12, %c0_13] : memref<1x4x8x128xf32, #tpu.memory_space<vmem>>, vector<1x1x8x128xf32>
    %20 = vector.shape_cast %19 : vector<1x1x8x128xf32> to vector<8x128xf32>
    %cst_14 = arith.constant dense<0.000000e+00> : vector<8x128xf32>
    %21 = vector.multi_reduction <add>, %18, %cst_14 [0] : vector<1x8x128xf32> to vector<8x128xf32>
    %22 = arith.addf %20, %21 : vector<8x128xf32>
    %c0_15 = arith.constant 0 : index
    %c0_16 = arith.constant 0 : index
    %c0_17 = arith.constant 0 : index
    %c0_18 = arith.constant 0 : index
    %23 = vector.load %arg4[%c0_15, %c0_16, %c0_17, %c0_18] : memref<1x4x8x128xf32, #tpu.memory_space<vmem>>, vector<1x1x8x128xf32>
    %24 = vector.shape_cast %23 : vector<1x1x8x128xf32> to vector<8x128xf32>
    %25 = vector.shape_cast %22 : vector<8x128xf32> to vector<1x1x8x128xf32>
    tpu.vector_store %arg4[%c0_15, %c0_16, %c0_17, %c0_18], %25 {strides = array<i32>} : memref<1x4x8x128xf32, #tpu.memory_space<vmem>>, vector<1x1x8x128xf32>,
    %c0_19 = arith.constant 0 : index
    %c1 = arith.constant 1 : index
    %c0_20 = arith.constant 0 : index
    %c0_21 = arith.constant 0 : index
    %26 = vector.load %arg4[%c0_19, %c1, %c0_20, %c0_21] : memref<1x4x8x128xf32, #tpu.memory_space<vmem>>, vector<1x1x8x128xf32>
    %27 = vector.shape_cast %26 : vector<1x1x8x128xf32> to vector<8x128xf32>
    %28 = arith.mulf %6, %18 : vector<1x8x128xf32>
    %cst_22 = arith.constant dense<0.000000e+00> : vector<8x128xf32>
    %29 = vector.multi_reduction <add>, %28, %cst_22 [0] : vector<1x8x128xf32> to vector<8x128xf32>
    %30 = arith.addf %27, %29 : vector<8x128xf32>
    %c0_23 = arith.constant 0 : index
    %c1_24 = arith.constant 1 : index
    %c0_25 = arith.constant 0 : index
    %c0_26 = arith.constant 0 : index
    %31 = vector.load %arg4[%c0_23, %c1_24, %c0_25, %c0_26] : memref<1x4x8x128xf32, #tpu.memory_space<vmem>>, vector<1x1x8x128xf32>
    %32 = vector.shape_cast %31 : vector<1x1x8x128xf32> to vector<8x128xf32>
    %33 = vector.shape_cast %30 : vector<8x128xf32> to vector<1x1x8x128xf32>
    tpu.vector_store %arg4[%c0_23, %c1_24, %c0_25, %c0_26], %33 {strides = array<i32>} : memref<1x4x8x128xf32, #tpu.memory_space<vmem>>, vector<1x1x8x128xf32>,
    %c0_27 = arith.constant 0 : index
    %c2 = arith.constant 2 : index
    %c0_28 = arith.constant 0 : index
    %c0_29 = arith.constant 0 : index
    %34 = vector.load %arg4[%c0_27, %c2, %c0_28, %c0_29] : memref<1x4x8x128xf32, #tpu.memory_space<vmem>>, vector<1x1x8x128xf32>
    %35 = vector.shape_cast %34 : vector<1x1x8x128xf32> to vector<8x128xf32>
    %cst_30 = arith.constant dense<0.000000e+00> : vector<8x128xf32>
    %36 = vector.multi_reduction <add>, %6, %cst_30 [0] : vector<1x8x128xf32> to vector<8x128xf32>
    %37 = arith.addf %35, %36 : vector<8x128xf32>
    %c0_31 = arith.constant 0 : index
    %c2_32 = arith.constant 2 : index
    %c0_33 = arith.constant 0 : index
    %c0_34 = arith.constant 0 : index
    %38 = vector.load %arg4[%c0_31, %c2_32, %c0_33, %c0_34] : memref<1x4x8x128xf32, #tpu.memory_space<vmem>>, vector<1x1x8x128xf32>
    %39 = vector.shape_cast %38 : vector<1x1x8x128xf32> to vector<8x128xf32>
    %40 = vector.shape_cast %37 : vector<8x128xf32> to vector<1x1x8x128xf32>
    tpu.vector_store %arg4[%c0_31, %c2_32, %c0_33, %c0_34], %40 {strides = array<i32>} : memref<1x4x8x128xf32, #tpu.memory_space<vmem>>, vector<1x1x8x128xf32>,
    %c0_35 = arith.constant 0 : index
    %c3 = arith.constant 3 : index
    %c0_36 = arith.constant 0 : index
    %c0_37 = arith.constant 0 : index
    %41 = vector.load %arg4[%c0_35, %c3, %c0_36, %c0_37] : memref<1x4x8x128xf32, #tpu.memory_space<vmem>>, vector<1x1x8x128xf32>
    %42 = vector.shape_cast %41 : vector<1x1x8x128xf32> to vector<8x128xf32>
    %cst_38 = arith.constant 0.000000e+00 : f32
    %43 = vector.broadcast %cst_38 : f32 to vector<1x8x128xf32>
    %44 = arith.cmpf ogt, %6, %43 : vector<1x8x128xf32>
    %45 = arith.extui %44 : vector<1x8x128xi1> to vector<1x8x128xi32>
    %46 = arith.sitofp %45 : vector<1x8x128xi32> to vector<1x8x128xf32>
    %cst_39 = arith.constant dense<0.000000e+00> : vector<8x128xf32>
    %47 = vector.multi_reduction <add>, %46, %cst_39 [0] : vector<1x8x128xf32> to vector<8x128xf32>
    %48 = arith.addf %42, %47 : vector<8x128xf32>
    %c0_40 = arith.constant 0 : index
    %c3_41 = arith.constant 3 : index
    %c0_42 = arith.constant 0 : index
    %c0_43 = arith.constant 0 : index
    %49 = vector.load %arg4[%c0_40, %c3_41, %c0_42, %c0_43] : memref<1x4x8x128xf32, #tpu.memory_space<vmem>>, vector<1x1x8x128xf32>
    %50 = vector.shape_cast %49 : vector<1x1x8x128xf32> to vector<8x128xf32>
    %51 = vector.shape_cast %48 : vector<8x128xf32> to vector<1x1x8x128xf32>
    tpu.vector_store %arg4[%c0_40, %c3_41, %c0_42, %c0_43], %51 {strides = array<i32>} : memref<1x4x8x128xf32, #tpu.memory_space<vmem>>, vector<1x1x8x128xf32>,
    return
  }
  func.func @transform_0(%arg0: i32, %arg1: i32) -> (i32, i32, i32, i32) {
    %c0_i32 = arith.constant 0 : i32
    %c0_i32_0 = arith.constant 0 : i32
    %c0_i32_1 = arith.constant 0 : i32
    return %arg0, %arg1, %c0_i32, %c0_i32_0 : i32, i32, i32, i32
  }
  func.func @transform_1(%arg0: i32, %arg1: i32) -> (i32, i32, i32, i32) {
    %c0_i32 = arith.constant 0 : i32
    %c0_i32_0 = arith.constant 0 : i32
    %c0_i32_1 = arith.constant 0 : i32
    return %arg0, %arg1, %c0_i32, %c0_i32_0 : i32, i32, i32, i32
  }
  func.func @transform_2(%arg0: i32, %arg1: i32) -> (i32, i32, i32, i32) {
    %c0_i32 = arith.constant 0 : i32
    %c0_i32_0 = arith.constant 0 : i32
    %c0_i32_1 = arith.constant 0 : i32
    %c0_i32_2 = arith.constant 0 : i32
    return %arg0, %c0_i32, %c0_i32_0, %c0_i32_1 : i32, i32, i32, i32
  }
}

</mosaic_0001>

<bundles_post_ra>
// kernel: tpu_custom_call.1
= control target key start
LH: loop header
LB: loop body
LE: loop exit
PB: predicated region body
PF: predicated region fallthrough
CT: control target
= control target key end

     0   :  { %7 = vsyncpa [#allocation3], 0  ;;  %s816_s0 = inlined_call_operand.hbm [shape: f32[2,1,8,128], index: 0, kind: input, shape index: {}]   ;;  %s817_s1 = inlined_call_operand.hbm [shape: f32[2,1,8,128], index: 1, kind: input, shape index: {}]   ;;  %s818_s2 = inlined_call_operand.hbm [shape: f32[2,4,8,128], index: 2, kind: output, shape index: {}]  }
   0x1   :  { %9 = vsyncpa [#allocation3 + $0x1], 0 }
   0x2   :  { %10 = vsyncpa [#allocation6], 0 }
   0x3   :  { %12 = vsyncpa [#allocation6 + $0x1], 0 }
   0x4   :  { %13 = vsyncpa [#allocation4], 0 }
   0x5   :  { %15 = vsyncpa [#allocation4 + $0x1], 0  ;;  %s640_s9 = smov 0   ;;  %s642_s10 = smov 0  }
   0x6   :  { %s644_s11 = smov 0   ;;  %s646_s12 = smov 0  }
   0x7   :  { %s648_s13 = smov 0   ;;  %s650_s14 = smov 0  }
   0x8 LB: > { %s378_s15 = sadd.s32 4294967295, %s617_s14   ;;  %s379_s16 = sadd.s32 4294967294, %s617_s14   ;;  %s617_s14 = sphi %s650_s14, %s21_s14   ;;  %s613_s13 = sphi %s648_s13, %s830_s13   ;;  %s609_s12 = sphi %s646_s12, %s829_s12   ;;  %s605_s11 = sphi %s644_s11, %s828_s11   ;;  %s601_s10 = sphi %s642_s10, %s827_s10   ;;  %s597_s9 = sphi %s640_s9, %s826_s9  }
   0x9   : > { %s33_s17 = sadd.s32 1, %s613_s13  ;;  %s42_s18 = sadd.s32 1, %s605_s11 }
   0xa   : > { %p35_p0 = scmp.ge.s32.totalorder %s33_s17, 2  ;;  %p49_p1 = scmp.ne.s32.totalorder %s605_s11, %s601_s10 }
   0xb   : > { %p50_p2 = scmp.eq.s32.totalorder %s617_s14, 0  ;;  %p55_p3 = scmp.ne.s32.totalorder %s601_s10, %s597_s9 }
   0xc   : > { %s832_s17 = smov (%p35_p0, %s33_s17), 0  ;;  %p56_p5 = scmp.eq.s32.totalorder %s378_s15, 0 }
   0xd   : > { %p681_p4 = por %p50_p2, %p49_p1  ;;  %s37_s20 = ssub.s32 %s613_s13, %s832_s17 }
   0xe   : > { %p107_p6 = scmp.eq.s32.totalorder %s378_s15, 1  ;;  %p40_p7 = scmp.eq.s32.totalorder %s37_s20, 0 }
   0xf   : > { %p687_p8 = por %p56_p5, %p55_p3  ;;  %p113_p10 = scmp.eq.s32.totalorder %s379_s16, 1 }
  0x10   : > { %p691_p9 = por %p107_p6, %p49_p1  ;;  %p420_p13 = scmp.lt.s32.totalorder %s617_s14, 2 }
  0x11   : > { %s696_s23 = scalar_select %p40_p7, %s605_s11, %s42_s18  }
  0x12   : > { %p698_p11 = por %p113_p10, %p55_p3  ;;  %s705_s25 = sand.u32 1, %s605_s11  }
  0x13   : > { %s382_s26 = sshll.u32 %s705_s25, 3  ;;  %s383_s27 = sshll.u32 %s613_s13, 7 }
  0x14   : > { %s143_s30 = scalar_lea.hbm %s816_s0, %s383_s27  ;;  %s137_s3 = scalar_lea.vmem [#allocation2], %s382_s26 }
  0x15   : > { %s145_s4 = sshll.u32 %s137_s3, 4  ;;  %p714_p0 = pnand %p420_p13, %p681_p4  ;;  %s146_s4 = int_to_ptr.vmem [resolvable:$true] %s145_s4 }
  0x16   : > { %p386_p1 = scmp.ge.s32.totalorder %s617_s14, 1  ;;  %p169_p2 = scmp.lt.s32.totalorder %s617_s14, 3 }
  0x17   : > { %s134_s6 = scalar_lea.sflag [#allocation3], %s705_s25  ;;  %p479_p3 = pneg %p714_p0 }
  0x18   : > { %s490_s7 = scalar_lea.vmem %s146_s4, 128  ;;  %s619_s8 = smov [#allocation2]  }
  0x19   : > { %p491_p5 = scmp.ne.s32.totalorder %s146_s4, %s490_s7  ;;  %s495_s15 = sshll.u32 %s619_s8, 4  ;;  %s496_s15 = int_to_ptr.vmem [resolvable:$false] %s495_s15 }
  0x1a   : > { %s497_s16 = scalar_lea.vmem %s496_s15, 256  ;;  %p498_p4 = scmp.lt.s32.totalorder %s146_s4, %s496_s15 }
  0x1b   : > { %p493_p6 = pnand %p491_p5, %p479_p3  ;;  %p499_p10 = scmp.lt.s32.totalorder %s497_s16, %s490_s7 }
  0x1d   : > { %p494_p7 = pneg %p493_p6  ;;  %p500_p13 = por %p499_p10, %p498_p4 }
  0x1f   : > { %p501_p12 = pnand %p500_p13, %p494_p7 }
  0x21   : > { %504 = shalt.err (!%p501_p12)
}
  0x22   : > { %412 = dma.hbm_to_vmem [thread:$0]  (!%p714_p0), %s143_s30, 128, %s146_s4, %s134_s6  }
  0x23   : > { %p732_p5 = pnand %p386_p1, %p169_p2  ;;  %s162_s28 = scalar_lea.hbm %s817_s1, %s383_s27 }
  0x24   : > { %s156_s29 = scalar_lea.vmem [#allocation5], %s382_s26  ;;  %s153_s7 = scalar_lea.sflag [#allocation6], %s705_s25 }
  0x25   : > { %s164_s3 = sshll.u32 %s156_s29, 4  ;;  %s620_s30 = smov [#allocation5]   ;;  %s165_s3 = int_to_ptr.vmem [resolvable:$true] %s164_s3 }
  0x26   : > { %s518_s8 = scalar_lea.vmem %s165_s3, 128  ;;  %s523_s4 = sshll.u32 %s620_s30, 4  ;;  %s524_s4 = int_to_ptr.vmem [resolvable:$false] %s523_s4 }
  0x27   : > { %p519_p12 = scmp.ne.s32.totalorder %s165_s3, %s518_s8  ;;  %s525_s6 = scalar_lea.vmem %s524_s4, 256 }
  0x28   : > { %p526_p1 = scmp.lt.s32.totalorder %s165_s3, %s524_s4  ;;  %p527_p2 = scmp.lt.s32.totalorder %s525_s6, %s518_s8 }
  0x29   : > { %p521_p6 = pnand %p519_p12, %p479_p3 }
  0x2a   : > { %p528_p4 = por %p527_p2, %p526_p1 }
  0x2b   : > { %p522_p7 = pneg %p521_p6 }
  0x2d   : > { %p529_p10 = pnand %p528_p4, %p522_p7 }
  0x2f   : > { %532 = shalt.err (!%p529_p10)
}
  0x30   : > { %415 = dma.hbm_to_vmem [thread:$0]  (!%p714_p0), %s162_s28, 128, %s165_s3, %s153_s7  }
  0x31   : > { %173 = sbr.rel (%p732_p5) target bundleno = 114 (0x72), region = 28  ;;  %s748_s25 = sand.u32 (!%p732_p5), 1, %s601_s10  }
  0x32   : > { %s387_s26 = sshll.u32 (!%p732_p5), %s748_s25, 3  ;;  %s176_s27 = scalar_lea.sflag (!%p732_p5), [#allocation3], %s748_s25 }
  0x33   : > { %s179_s15 = scalar_lea.vmem (!%p732_p5), [#allocation2], %s387_s26 }
  0x36   : > { %584 = dma.done.wait (%p687_p8), %s176_s27, 128  }
  0x37   : > { %586 = vsyncadd (%p687_p8), %s176_s27, 4294967168  ;;  %s185_s5 = scalar_lea.sflag [#allocation6], %s748_s25  ;;  %s188_s16 = scalar_lea.vmem [#allocation5], %s387_s26 }
  0x38   : > { %588 = dma.done.wait (%p687_p8), %s185_s5, 128  }
  0x39   : > { %590 = vsyncadd (%p687_p8), %s185_s5, 4294967168  ;;  %s389_s18 = sshll.u32 %s748_s25, 5  ;;  %v222_v0 = vld [vmem:[%s179_s15] sm:$0xff]  ;;  %v223_v1 = vld [vmem:[%s188_s16] sm:$0xff]  ;;  %v621_v4 = vmov 0.0   ;;  %s402_s21 = sshll.u32 %s609_s12, 9 }
  0x3a   : > { %v227_v2 = vand.u32 2147483647, %v222_v0  ;;  %vm252_vm0 = vcmp.gt.f32.partialorder %v223_v1, 0.0  ;;  %s213_s19 = scalar_lea.vmem [#allocation7], %s389_s18  ;;  %v224_v9 = vmax.f32 %v222_v0, 0.0  ;;  %v225_v10 = vmul.f32 %v223_v1, %v222_v0  ;;  %s766_s3 = scalar_lea.hbm %s818_s2, %s402_s21 }
  0x3b   : > { %393 = vst [vmem:[%s213_s19 + $0x10] sm:$0xff] %v223_v1  ;;  %v395_v5 = vsel %vm252_vm0, 1.0, %v621_v4  ;;  %s272_s20 = sshll.u32 %s213_s19, 4  ;;  %s259_s7 = scalar_lea.sflag [#allocation4], %s748_s25  ;;  %s768_s20 = int_to_ptr.vmem [resolvable:$true] %s272_s20 }
  0x3c   : > { %v228_v3 = vsub.f32 0.0, %v227_v2  ;;  %396 = vst [vmem:[%s213_s19 + $0x18] sm:$0xff] %v395_v5  ;;  %v226_v11 = vsub.f32 %v224_v9, %v225_v10  ;;  %s533_s8 = scalar_lea.vmem %s768_s20, 512  ;;  %s622_s12 = smov [#allocation7]  }
  0x3d   : > { %p534_p8 = scmp.ne.s32.totalorder %s768_s20, %s533_s8  ;;  %s537_s30 = sshll.u32 %s622_s12, 4  ;;  %s538_s30 = int_to_ptr.vmem [resolvable:$false] %s537_s30 }
  0x3e   : > { %v229_v6 = vmul.f32 1.442695, %v228_v3  ;;  %s539_s4 = scalar_lea.vmem %s538_s30, 1024  ;;  %p540_p13 = scmp.lt.s32.totalorder %s768_s20, %s538_s30 }
  0x3f   : > { %p535_p0 = pnand %p534_p8, %p691_p9  ;;  %p541_p5 = scmp.lt.s32.totalorder %s539_s4, %s533_s8 }
  0x40   : > { %473 = vpow2.f32 %v229_v6 }
  0x41   : > { %p536_p3 = pneg %p535_p0  ;;  %p542_p12 = por %p541_p5, %p540_p13 }
  0x43   : > { %p543_p6 = pnand %p542_p12, %p536_p3 }
  0x4d   : > { %v474_v7 = vpop.eup %473 }
  0x4e   : > { %v231_v8 = vadd.f32 1.0, %v474_v7 }
  0x50   : > { %475 = vlog2.f32 %v231_v8 }
  0x5d   : > { %v476_v12 = vpop.eup %475 }
  0x5e   : > { %v233_v13 = vmul.f32 0.6931472, %v476_v12 }
  0x60   : > { %v234_v14 = vadd.f32 %v233_v13, %v226_v11 }
  0x62   : > { %v241_v15 = vmul.f32 %v234_v14, %v223_v1  ;;  %238 = vst [vmem:[%s213_s19] sm:$0xff] %v234_v14 }
  0x64   : > { %391 = vst [vmem:[%s213_s19 + $0x8] sm:$0xff] %v241_v15 }
  0x65   : > { %546 = shalt.err (!%p543_p6)
}
  0x66   : > { %s547_s6 = scalar_lea.hbm %s766_s3, 512  ;;  %s551_s15 = scalar_lea.hbm %s818_s2, 1024 }
  0x67   : > { %p548_p7 = scmp.ne.s32.totalorder %s766_s3, %s547_s6  ;;  %p552_p4 = scmp.lt.s32.totalorder %s766_s3, %s818_s2 }
  0x68   : > { %p553_p10 = scmp.lt.s32.totalorder %s551_s15, %s547_s6 }
  0x69   : > { %p549_p1 = pnand %p548_p7, %p691_p9 }
  0x6a   : > { %p554_p8 = por %p553_p10, %p552_p4 }
  0x6b   : > { %p550_p2 = pneg %p549_p1 }
  0x6d   : > { %p555_p0 = pnand %p554_p8, %p550_p2 }
  0x6f   : > { %558 = shalt.err (!%p555_p0)
}
  0x70   : > { %s623_s18 = smov 128   ;;  %s624_s19 = smov 8  }
  0x71   : > { %407 = dma.vmem_to_hbm [thread:$0]  (%p691_p9), %s768_s20, 512, %s766_s3, %s259_s7, %s623_s18, %s623_s18, %s624_s19  }
  0x72 PF: > { %s287_s21 = sand.u32 1, %s597_s9   ;;  %p825_p3 = scmp.ge.s32.totalorder %s617_s14, 2 }
  0x73   : > { %s288_s28 = scalar_lea.sflag [#allocation4], %s287_s21 }
  0x74   : > { %p417_p13 = pnand %p825_p3, %p698_p11 }
  0x76   : > { %p418_p5 = pneg %p417_p13 }
  0x78   : > { %592 = dma.done.wait (%p418_p5), %s288_s28, 512  }
  0x79   : > { %594 = vsyncadd (%p418_p5), %s288_s28, 4294966784  ;;  %s21_s14 = sadd.s32 1, %s617_s14   ;;  %s826_s9 = smov %s601_s10 }
  0x7a   : > { %p18_p12 = scmp.ge.s32.totalorder %s21_s14, 4   ;;  %s827_s10 = smov %s605_s11 }
  0x7b   : > { %s828_s11 = smov %s696_s23  ;;  %s829_s12 = smov %s613_s13 }
  0x7c   : > { %s830_s13 = smov %s832_s17  ;;  %20 = sbr.rel (!%p18_p12) target bundleno = 8 (0x8), region = 93 }
  0x81   :  { %293 = vsyncpa [#allocation3], 1 }
  0x82   :  { %295 = vsyncpa [#allocation3 + $0x1], 1 }
  0x83   :  { %296 = vsyncpa [#allocation6], 1 }
  0x84   :  { %298 = vsyncpa [#allocation6 + $0x1], 1 }
  0x85   :  { %299 = vsyncpa [#allocation4], 1 }
  0x86   :  { %301 = vsyncpa [#allocation4 + $0x1], 1 }

</bundles_post_ra>
